<compile_context>
chip_gen: v6e
topology: v6e:2x2x1
jax: 0.10.0
libtpu: 0.0.40
codegen_flags: <defaults>
</compile_context>

<pallas_src>
import functools
import math

import jax
import jax.numpy as jnp
from jax import lax
from jax.experimental import pallas as pl
from jax.experimental.pallas import tpu as pltpu


# Finite "minus infinity" for causal masking (avoids -inf - -inf = NaN hazards).
_MASK_VALUE = -0.7 * float(jnp.finfo(jnp.float32).max)


# ---------------------------------------------------------------------------
# Kernel A: QKV projection with streamed weight chunks.
# ---------------------------------------------------------------------------
def _qkv_proj_kernel(x_ref, w_ref, b_ref, o_ref):
    # x_ref : (1, tt, D)      sequence tile (reused across the weight grid axes)
    # w_ref : (1, D, tn)      one weight chunk, streamed via the grid
    # b_ref : (1, 1, tn)
    # o_ref : (1, 1, tt, tn)
    y = jnp.dot(x_ref[0], w_ref[0], preferred_element_type=jnp.float32)
    o_ref[0, 0] = (y + b_ref[0]).astype(o_ref.dtype)


# ---------------------------------------------------------------------------
# Kernel B: flash attention (online softmax) + fused output projection.
# ---------------------------------------------------------------------------
def _flash_attn_kernel(q_ref, k_ref, v_ref, wout_ref, bout_ref, o_ref,
                       m_sc, l_sc, acc_sc, oacc_sc, *, tq, tk):
    # q_ref    : (1, 1, tq, hd)   head h, query tile qi (scale already folded in)
    # k_ref    : (1, 1, tk, hd)   head h, kv tile (index clamped at the diagonal)
    # v_ref    : (1, 1, tk, hd)
    # wout_ref : (H, hd, D)       full W_out, VMEM-resident for the whole launch
    # bout_ref : (1, D)
    # o_ref    : (1, tq, D)
    qi = pl.program_id(1)
    h = pl.program_id(2)
    ki = pl.program_id(3)
    nh = pl.num_programs(2)
    nk = pl.num_programs(3)

    q_start = qi * tq
    k_start = ki * tk

    # New (batch, q-tile): zero the lane-dense output-projection accumulator.
    @pl.when(jnp.logical_and(h == 0, ki == 0))
    def _():
        oacc_sc[...] = jnp.zeros_like(oacc_sc)

    # New head: reset the online-softmax state.
    @pl.when(ki == 0)
    def _():
        m_sc[...] = jnp.full_like(m_sc, _MASK_VALUE)
        l_sc[...] = jnp.zeros_like(l_sc)
        acc_sc[...] = jnp.zeros_like(acc_sc)

    def process(apply_mask):
        q = q_ref[0, 0]                                       # (tq, hd)
        k = k_ref[0, 0]                                       # (tk, hd)
        v = v_ref[0, 0]                                       # (tk, hd)
        # QK^T: contract last dims of both operands — no k.T relayout.
        s = lax.dot_general(q, k, (((1,), (1,)), ((), ())),
                            preferred_element_type=jnp.float32)   # (tq, tk)
        if apply_mask:
            # Block-local causal mask (tiny iotas, only on straddling tiles).
            rmc = (lax.broadcasted_iota(jnp.int32, (tq, tk), 0)
                   - lax.broadcasted_iota(jnp.int32, (tq, tk), 1))
            s = jnp.where(rmc >= (k_start - q_start), s, _MASK_VALUE)
        m_prev = m_sc[...]
        m_new = jnp.maximum(m_prev, jnp.max(s, axis=-1, keepdims=True))
        alpha = jnp.exp(m_prev - m_new)
        p = jnp.exp(s - m_new)                                # unnormalized probs
        l_sc[...] = alpha * l_sc[...] + jnp.sum(p, axis=-1, keepdims=True)
        acc_sc[...] = alpha * acc_sc[...] + jnp.dot(
            p.astype(v.dtype), v, preferred_element_type=jnp.float32)
        m_sc[...] = m_new

    # kv tile entirely below the diagonal: every key visible, no mask work.
    @pl.when(k_start + (tk - 1) <= q_start)
    def _():
        process(apply_mask=False)

    # kv tile straddling the diagonal: apply the block-local causal mask.
    @pl.when(jnp.logical_and(k_start + (tk - 1) > q_start,
                             k_start <= q_start + (tq - 1)))
    def _():
        process(apply_mask=True)

    # (tiles with k_start > q_start + tq - 1 are entirely masked: compute is
    #  skipped, and their K/V index_maps are clamped so no DMA is issued.)

    # End of this head's kv sweep: normalize the (tq, hd) head output (exact
    # reciprocal) and fold it into the lane-dense output-projection accumulator.
    @pl.when(ki == nk - 1)
    def _():
        attn_h = acc_sc[...] * pl.reciprocal(l_sc[...])       # (tq, hd)
        oacc_sc[...] += jnp.dot(attn_h.astype(wout_ref.dtype), wout_ref[h],
                                preferred_element_type=jnp.float32)   # (tq, D)

    # All heads done: add bias and store the lane-dense (tq, D) output tile.
    @pl.when(jnp.logical_and(h == nh - 1, ki == nk - 1))
    def _():
        o_ref[0] = (oacc_sc[...] + bout_ref[...]).astype(o_ref.dtype)


# ---------------------------------------------------------------------------
# Wrapper
# ---------------------------------------------------------------------------
def _seq_tile(total, cap):
    if total <= cap:
        return total
    t = cap
    while total % t:
        t -= 8
    return t


def _lane_tile(total, cap):
    if total <= cap:
        return total
    t = (cap // 128) * 128
    while total % t:
        t -= 128
    return t


def _vmem_limit(estimate_bytes):
    # Explicit scoped-VMEM limit: at/above the 16/32 MiB v5e/v6e defaults so the
    # larger tiles fit, below v7x's 64 MiB physical VMEM per TensorCore.
    return int(min(max(estimate_bytes, 32 << 20), 62 << 20))


def masked_mhsa(x, wqkv, bqkv, wout, bout, *, num_heads,
                qkv_dtype=jnp.bfloat16, q_tile=None, kv_tile=None,
                proj_seq_tile=None):
    """Forward pass of MaskedMultiHeadSelfAttention.

    x    : (B, T, D)
    wqkv : (D, 3D)  math layout (in, out); output columns ordered [3, H, hd]
    bqkv : (1, 3D)
    wout : (D, D)   math layout (in, out); input rows ordered [H, hd]
    bout : (1, D)
    qkv_dtype : dtype of the intermediate Q/K/V stream.  bf16 (default) halves
        the K/V HBM traffic that is re-read once per q-tile and takes the
        native bf16 MXU path; all accumulation in kernel B stays f32.
    """
    B, T, D = x.shape
    H = num_heads
    assert D % H == 0, "d_model must be divisible by num_heads"
    hd = D // H
    assert T % 8 == 0, "sequence length must be a multiple of 8 (sublane tile)"
    out_dtype = x.dtype

    # Fold the softmax scale 1/sqrt(hd) into the Q columns of the projection.
    # Mathematically identical and removes a per-kv-step (tq, hd) VPU multiply.
    scale = 1.0 / math.sqrt(hd)
    col_scale = jnp.concatenate(
        [jnp.full((D,), scale, wqkv.dtype), jnp.ones((2 * D,), wqkv.dtype)])
    wqkv = wqkv * col_scale
    bqkv = bqkv * col_scale

    # Intermediate QKV layout:
    #  * hd % 128 == 0 : lane-dense (B, 3, T, D) — wide-N projection matmuls,
    #    unmasked vst stores, and kernel B slices 128-aligned head columns.
    #  * otherwise     : head-major (B, 3H, T, hd) — kernel B block last dim
    #    equals the full dim, so no lane relayout.
    lane_dense = (hd % 128 == 0)
    if lane_dense:
        C, N = 3, D
    else:
        C, N = 3 * H, hd
    w_h = wqkv.reshape(D, C, N).transpose(1, 0, 2)            # (C, D, N)
    b_h = bqkv.reshape(C, 1, N)
    w_out_h = wout.reshape(H, hd, D)
    b_out = bout.reshape(1, D)

    tt = proj_seq_tile or _seq_tile(T, 256)
    tq = q_tile or _seq_tile(T, 256)
    tk = kv_tile or _seq_tile(T, 256)
    tn = _lane_tile(N, 512) if lane_dense else N
    assert T % tt == 0 and T % tq == 0 and T % tk == 0
    assert tt % 8 == 0 and tq % 8 == 0 and tk % 8 == 0

    isz = lambda dt: jnp.dtype(dt).itemsize

    # --- Kernel A: QKV projection (streamed weights) ------------------------
    est_a = 2 * (tt * D * isz(x.dtype) + D * tn * isz(w_h.dtype)
                 + tn * isz(b_h.dtype) + tt * tn * isz(qkv_dtype)) + (4 << 20)
    qkvh = pl.pallas_call(
        _qkv_proj_kernel,
        out_shape=jax.ShapeDtypeStruct((B, C, T, N), qkv_dtype),
        grid=(B, T // tt, C, N // tn),
        in_specs=[
            # x tile: constant over the two inner (weight) axes -> DMA'd once
            # per (b, t) and reused for every weight chunk.
            pl.BlockSpec((1, tt, D), lambda b, t, c, n: (b, t, 0)),
            # Weight / bias chunks streamed through the pipeline.
            pl.BlockSpec((1, D, tn), lambda b, t, c, n: (c, 0, n)),
            pl.BlockSpec((1, 1, tn), lambda b, t, c, n: (c, 0, n)),
        ],
        out_specs=pl.BlockSpec((1, 1, tt, tn), lambda b, t, c, n: (b, c, t, n)),
        compiler_params=pltpu.CompilerParams(
            dimension_semantics=("parallel", "parallel", "arbitrary", "arbitrary"),
            vmem_limit_bytes=_vmem_limit(est_a)),
    )(x, w_h, b_h)

    # --- Kernel B: flash attention + fused output projection ----------------
    nk = T // tk

    def kv_block(qi, ki):
        # Clamp kv tiles entirely above the causal diagonal to the last tile
        # this q-tile actually needs: an unchanged block index means Pallas
        # issues no fresh DMA, saving ~half of the K/V HBM traffic.
        return jnp.minimum(ki, (qi * tq + tq - 1) // tk)

    if lane_dense:
        q_spec = pl.BlockSpec((1, 1, tq, hd), lambda b, qi, h, ki: (b, 0, qi, h))
        k_spec = pl.BlockSpec((1, 1, tk, hd),
                              lambda b, qi, h, ki: (b, 1, kv_block(qi, ki), h))
        v_spec = pl.BlockSpec((1, 1, tk, hd),
                              lambda b, qi, h, ki: (b, 2, kv_block(qi, ki), h))
    else:
        q_spec = pl.BlockSpec((1, 1, tq, hd), lambda b, qi, h, ki: (b, h, qi, 0))
        k_spec = pl.BlockSpec((1, 1, tk, hd),
                              lambda b, qi, h, ki: (b, H + h, kv_block(qi, ki), 0))
        v_spec = pl.BlockSpec((1, 1, tk, hd),
                              lambda b, qi, h, ki: (b, 2 * H + h, kv_block(qi, ki), 0))

    est_b = (2 * (tq * hd + 2 * tk * hd) * isz(qkv_dtype)
             + 2 * D * D * isz(wout.dtype)          # resident W_out (x2 buffers)
             + 2 * D * isz(bout.dtype)
             + 2 * tq * D * isz(out_dtype)
             + tq * (2 + hd + D) * 4                # f32 scratch
             + (4 << 20))

    out = pl.pallas_call(
        functools.partial(_flash_attn_kernel, tq=tq, tk=tk),
        out_shape=jax.ShapeDtypeStruct((B, T, D), out_dtype),
        grid=(B, T // tq, H, nk),
        in_specs=[
            q_spec, k_spec, v_spec,
            # Full W_out with a constant index_map -> DMA'd once per launch
            # instead of once per (b, q-tile).  For very large D on v7x
            # (64 MiB VMEM) a separate lane-dense (B*T,D)@(D,D) out-proj pass
            # would be preferable; not needed at these sizes.
            pl.BlockSpec((H, hd, D), lambda b, qi, h, ki: (0, 0, 0)),
            pl.BlockSpec((1, D), lambda b, qi, h, ki: (0, 0)),
        ],
        out_specs=pl.BlockSpec((1, tq, D), lambda b, qi, h, ki: (b, qi, 0)),
        scratch_shapes=[
            pltpu.VMEM((tq, 1), jnp.float32),    # m: running row max
            pltpu.VMEM((tq, 1), jnp.float32),    # l: running denominator
            pltpu.VMEM((tq, hd), jnp.float32),   # acc: running P @ V (per head)
            pltpu.VMEM((tq, D), jnp.float32),    # lane-dense out-proj accumulator
        ],
        # B and T/tq are the megacore-parallel axes (keep B*(T/tq) >= #cores on
        # v7x); the head / kv axes carry accumulator state -> arbitrary.
        compiler_params=pltpu.CompilerParams(
            dimension_semantics=("parallel", "parallel", "arbitrary", "arbitrary"),
            vmem_limit_bytes=_vmem_limit(est_b)),
    )(qkvh, qkvh, qkvh, w_out_h, b_out)
    return out


def masked_mhsa_ref(x, wqkv, bqkv, wout, bout, *, num_heads):
    """Plain-JAX reference mirroring the PyTorch forward."""
    B, T, D = x.shape
    hd = D // num_heads
    qkv = x @ wqkv + bqkv[0]                                   # (B, T, 3D)
    qkv = qkv.reshape(B, T, 3, num_heads, hd).transpose(2, 0, 3, 1, 4)
    Q, K, V = qkv[0], qkv[1], qkv[2]                           # (B, H, T, hd)
    s = jnp.einsum("bhtd,bhsd->bhts", Q, K) / (hd ** 0.5)
    mask = jnp.tril(jnp.ones((T, T)))[None, None]
    s = jnp.where(mask == 0, -jnp.inf, s)
    w = jax.nn.softmax(s, axis=-1)
    o = jnp.einsum("bhts,bhsd->bhtd", w, V)                    # (B, H, T, hd)
    o = o.transpose(0, 2, 1, 3).reshape(B, T, D)
    return o @ wout + bout[0]


if __name__ == "__main__":
    def run_case(B, T, D, H, qkv_dtype, q_tile, kv_tile, tol):
        key = jax.random.PRNGKey(0)
        kx, kw1, kb1, kw2, kb2 = jax.random.split(key, 5)
        w_scale = 0.5 / math.sqrt(D)
        x = jax.random.normal(kx, (B, T, D), jnp.float32)
        wqkv = jax.random.normal(kw1, (D, 3 * D), jnp.float32) * w_scale
        bqkv = jax.random.normal(kb1, (1, 3 * D), jnp.float32) * w_scale
        wout = jax.random.normal(kw2, (D, D), jnp.float32) * w_scale
        bout = jax.random.normal(kb2, (1, D), jnp.float32) * w_scale

        out = masked_mhsa(x, wqkv, bqkv, wout, bout, num_heads=H,
                          qkv_dtype=qkv_dtype, q_tile=q_tile, kv_tile=kv_tile)
        out = jax.block_until_ready(out)

        ref = masked_mhsa_ref(x, wqkv, bqkv, wout, bout, num_heads=H)
        assert out.shape == (B, T, D)
        max_err = jnp.max(jnp.abs(out - ref))
        assert jnp.allclose(out, ref, atol=tol, rtol=tol), (
            f"mismatch (B={B},T={T},D={D},H={H},qkv_dtype={qkv_dtype}): "
            f"max abs err {max_err}")

    # Head-major path (hd=8 < 128): multi-tile causal grid, f32 QKV stream.
    run_case(2, 16, 32, 4, jnp.float32, 8, 8, 2e-2)
    # Same shapes with the default bf16 QKV stream (halved K/V HBM traffic);
    # tolerance loosened accordingly for the bf16 intermediate.
    run_case(2, 16, 32, 4, jnp.bfloat16, 8, 8, 3e-2)
    # Lane-dense path (hd=128): wide-N projection matmuls, 128-aligned head
    # column slices in kernel B, multi-tile causal grid.
    run_case(2, 16, 256, 2, jnp.float32, 8, 8, 2e-2)

    print("KERNEL_OK")
</pallas_src>

<mosaic_0001>
module attributes {stable_mosaic.version = 11 : i64} {
  func.func @_qkv_proj_kernel(%arg0: i32, %arg1: i32, %arg2: i32, %arg3: i32, %arg4: memref<1x16x32xf32, #tpu.memory_space<vmem>>, %arg5: memref<1x32x8xf32, #tpu.memory_space<vmem>>, %arg6: memref<1x1x8xf32, #tpu.memory_space<vmem>>, %arg7: memref<1x1x16x8xf32, #tpu.memory_space<vmem>>) attributes {dimension_semantics = [#tpu.dimension_semantics<parallel>, #tpu.dimension_semantics<parallel>, #tpu.dimension_semantics<arbitrary>, #tpu.dimension_semantics<arbitrary>], iteration_bounds = array<i64: 2, 1, 12, 1>, scalar_prefetch = 0 : i64, scratch_operands = 0 : i64, tpu.core_type = #tpu.core_type<tc>, window_params = [{transform_indices = @transform_0, window_bounds = array<i64: 1, 16, 32>}, {transform_indices = @transform_1, window_bounds = array<i64: 1, 32, 8>}, {transform_indices = @transform_2, window_bounds = array<i64: 1, 1, 8>}, {transform_indices = @transform_3, window_bounds = array<i64: 1, 1, 16, 8>}]} {
    %c0 = arith.constant 0 : index
    %c0_0 = arith.constant 0 : index
    %c0_1 = arith.constant 0 : index
    %0 = vector.load %arg4[%c0, %c0_0, %c0_1] : memref<1x16x32xf32, #tpu.memory_space<vmem>>, vector<1x16x32xf32>
    %1 = vector.shape_cast %0 : vector<1x16x32xf32> to vector<16x32xf32>
    %c0_2 = arith.constant 0 : index
    %c0_3 = arith.constant 0 : index
    %c0_4 = arith.constant 0 : index
    %2 = vector.load %arg5[%c0_2, %c0_3, %c0_4] : memref<1x32x8xf32, #tpu.memory_space<vmem>>, vector<1x32x8xf32>
    %3 = vector.shape_cast %2 : vector<1x32x8xf32> to vector<32x8xf32>
    %cst = arith.constant dense<0.000000e+00> : vector<16x8xf32>
    %4 = tpu.matmul %1, %3, %cst {dimension_numbers = #tpu.dot_dimension_numbers<[1], [0], [0], [1], [0, 0, 1, 1], [], []>} : vector<16x32xf32>, vector<32x8xf32>, vector<16x8xf32> -> vector<16x8xf32>
    %c0_5 = arith.constant 0 : index
    %c0_6 = arith.constant 0 : index
    %c0_7 = arith.constant 0 : index
    %5 = vector.load %arg6[%c0_5, %c0_6, %c0_7] : memref<1x1x8xf32, #tpu.memory_space<vmem>>, vector<1x1x8xf32>
    %6 = vector.shape_cast %5 : vector<1x1x8xf32> to vector<1x8xf32>
    %7 = vector.broadcast %6 : vector<1x8xf32> to vector<16x8xf32>
    %8 = arith.addf %4, %7 : vector<16x8xf32>
    %c0_8 = arith.constant 0 : index
    %c0_9 = arith.constant 0 : index
    %c0_10 = arith.constant 0 : index
    %c0_11 = arith.constant 0 : index
    %9 = vector.load %arg7[%c0_8, %c0_9, %c0_10, %c0_11] : memref<1x1x16x8xf32, #tpu.memory_space<vmem>>, vector<1x1x16x8xf32>
    %10 = vector.shape_cast %9 : vector<1x1x16x8xf32> to vector<16x8xf32>
    %11 = vector.shape_cast %8 : vector<16x8xf32> to vector<1x1x16x8xf32>
    tpu.vector_store %arg7[%c0_8, %c0_9, %c0_10, %c0_11], %11 {strides = array<i32>} : memref<1x1x16x8xf32, #tpu.memory_space<vmem>>, vector<1x1x16x8xf32>,
    return
  }
  func.func @transform_0(%arg0: i32, %arg1: i32, %arg2: i32, %arg3: i32) -> (i32, i32, i32) {
    %c0_i32 = arith.constant 0 : i32
    %c0_i32_0 = arith.constant 0 : i32
    return %arg0, %arg1, %c0_i32 : i32, i32, i32
  }
  func.func @transform_1(%arg0: i32, %arg1: i32, %arg2: i32, %arg3: i32) -> (i32, i32, i32) {
    %c0_i32 = arith.constant 0 : i32
    %c0_i32_0 = arith.constant 0 : i32
    return %arg2, %c0_i32, %arg3 : i32, i32, i32
  }
  func.func @transform_2(%arg0: i32, %arg1: i32, %arg2: i32, %arg3: i32) -> (i32, i32, i32) {
    %c0_i32 = arith.constant 0 : i32
    %c0_i32_0 = arith.constant 0 : i32
    return %arg2, %c0_i32, %arg3 : i32, i32, i32
  }
  func.func @transform_3(%arg0: i32, %arg1: i32, %arg2: i32, %arg3: i32) -> (i32, i32, i32, i32) {
    %c0_i32 = arith.constant 0 : i32
    return %arg0, %arg2, %arg1, %arg3 : i32, i32, i32, i32
  }
}

</mosaic_0001>

<bundles_post_ra>
// kernel: tpu_custom_call.1
= control target key start
LH: loop header
LB: loop body
LE: loop exit
PB: predicated region body
PF: predicated region fallthrough
CT: control target
= control target key end

     0   :  { %s684_s12 = smov 0   ;;  %s686_s13 = smov 0   ;;  %s743_s0 = inlined_call_operand.vmem [shape: f32[2,16,32], index: 0, kind: input, shape index: {}]   ;;  %s744_s1 = inlined_call_operand.vmem [shape: f32[12,32,8], index: 1, kind: input, shape index: {}]   ;;  %s745_s2 = inlined_call_operand.vmem [shape: f32[12,1,8], index: 2, kind: input, shape index: {}]   ;;  %s746_s3 = inlined_call_operand.vmem [shape: f32[2,12,16,8], index: 3, kind: output, shape index: {}]  }
   0x1   :  { %s688_s14 = smov 0   ;;  %s690_s15 = smov 0  }
   0x2   :  { %s692_s16 = smov 0  }
   0x3 LB: > { %s31_s17 = sadd.s32 1, %s654_s14  ;;  %s39_s18 = sadd.s32 1, %s658_s15  ;;  %s662_s16 = sphi %s692_s16, %s13_s16   ;;  %s658_s15 = sphi %s690_s15, %s750_s15   ;;  %s654_s14 = sphi %s688_s14, %s749_s14   ;;  %s650_s13 = sphi %s686_s13, %s748_s13   ;;  %s646_s12 = sphi %s684_s12, %s747_s12  }
   0x4   : > { %p33_p0 = scmp.ge.s32.totalorder %s31_s17, 12  ;;  %p552_p1 = scmp.ge.s32.totalorder %s662_s16, 1 }
   0x5   : > { %p204_p2 = scmp.lt.s32.totalorder %s662_s16, 25 }
   0x6   : > { %s752_s17 = smov (%p33_p0, %s31_s17), 0  ;;  %s754_s18 = smov (!%p33_p0, %s39_s18), %s658_s15 }
   0x7   : > { %p205_p3 = pnand %p552_p1, %p204_p2  ;;  %p41_p4 = scmp.ge.s32.totalorder %s754_s18, 2 }
   0x8   : > { %p267_p5 = scmp.lt.s32.totalorder (!%p205_p3), %s646_s12, 11  ;;  %p258_p6 = scmp.lt.s32.totalorder (!%p205_p3), %s650_s13, 1 }
   0x9   : > { %s756_s18 = smov (%p41_p4, %s754_s18), 0  ;;  %208 = sbr.rel (%p205_p3) target bundleno = 224 (0xe0), region = 32 }
   0xe   : > { %s758_s12 = smov (!%p267_p5, %s646_s12), 11  ;;  %s760_s13 = smov (!%p258_p6, %s650_s13), 1  ;;  %vm311_vm0 = vcmask 261120   ;;  %vm393_vm1 = vcmask 64512  }
   0xf   : > { %s565_s19 = sshll.u32 %s758_s12, 5  ;;  %s564_s23 = sshll.u32 %s760_s13, 4 }
  0x10   : > { %s274_s22 = scalar_lea.vmem %s744_s1, %s565_s19  ;;  %s265_s26 = scalar_lea.vmem %s743_s0, %s564_s23 }
  0x11   : > { %v303_v0 = vld [vmem:[%s274_s22 + $0x18] sm:$0xff]  ;;  %v302_v1 = vld [vmem:[%s274_s22 + $0x10] sm:$0xff]  ;;  %s583_s27 = smul.u32 24, %s760_s13  ;;  %v298_v2 = vld [vmem:[%s265_s26] sm:$0xff]  ;;  %s557_s28 = sshll.u32 %s758_s12, 1 }
  0x12   : > { %572 = vmatprep.subr.mxu0 %v303_v0  ;;  %v301_v3 = vld [vmem:[%s274_s22 + $0x8] sm:$0xff]  ;;  %580 = vmatprep.mubr.msk.f32.mxu0 %vm311_vm0, %v298_v2  ;;  %v300_v4 = vld [vmem:[%s274_s22] sm:$0xff]  ;;  %s280_s5 = scalar_lea.vmem %s745_s2, %s758_s12 }
  0x13   : > { %573 = vmatpush3.msra.mxu0 %v303_v0  ;;  %s294_s29 = sadd.s32 %s583_s27, %s557_s28  ;;  %v299_v5 = vld [vmem:[%s265_s26 + $0x8] sm:$0xff]  ;;  %v559_v6 = vld [vmem:[%s280_s5] ss:$0 sm:$0xff] }
  0x14   : > { %574 = vmatprep.subr.mxu0 %v302_v1  ;;  %s558_s6 = sshll.u32 %s294_s29, 3 }
  0x15   : > { %575 = vmatpush3.msra.mxu0 %v302_v1  ;;  %s296_s9 = scalar_lea.vmem %s746_s3, %s558_s6 }
  0x16   : > { %576 = vmatprep.subr.mxu0 %v301_v3 }
  0x17   : > { %577 = vmatpush3.msra.mxu0 %v301_v3 }
  0x18   : > { %578 = vmatprep.subr.mxu0 %v300_v4 }
  0x19   : > { %579 = vmatpush3.msra.mxu0 %v300_v4 }
  0x1a   : > { %581 = vmatmul.mubr.msk.f32.vlgmr.msra.gmra.mxu0 %vm311_vm0, %v299_v5 }
  0xda   : > { %v582_v7 = vpop.f32.mrf.mxu0 }
  0xdb   : > { %v390_v8 = vadd.f32 %v582_v7, %v559_v6 }
  0xdc   : > { %v384_v9 = vpop.f32.mrf.mxu0 }
  0xdd   : > { %395 = vst.msk [vmem:[%s296_s9 + $0x8] sm:$0xff] %vm393_vm1, %v390_v8  ;;  %v385_v10 = vadd.f32 %v559_v6, %v384_v9 }
  0xdf   : > { %394 = vst.msk [vmem:[%s296_s9] sm:$0xff] %vm393_vm1, %v385_v10 }
  0xe0 PF: > { %s13_s16 = sadd.s32 1, %s662_s16   ;;  %s747_s12 = smov %s654_s14 }
  0xe1   : > { %p10_p7 = scmp.ge.s32.totalorder %s13_s16, 26   ;;  %s748_s13 = smov %s658_s15 }
  0xe2   : > { %s749_s14 = smov %s752_s17  ;;  %s750_s15 = smov %s756_s18 }
  0xe3   :  { %12 = sbr.rel (!%p10_p7) target bundleno = 3 (0x3), region = 68 }

</bundles_post_ra>
